<compile_context>
chip_gen: v5e
topology: v5e:2x2
jax: 0.10.0
libtpu: 0.0.40
codegen_flags: <defaults>
</compile_context>

<pallas_src>
import functools

import jax
import jax.numpy as jnp
from jax import lax
from jax.experimental import pallas as pl
from jax.experimental.pallas import tpu as pltpu

BN_EPS = 1e-5


def _pick_tile_m(hw, max_tile=2048):
    """Largest multiple of 128 that divides hw (<= max_tile); else full hw."""
    best = None
    t = 128
    while t <= min(hw, max_tile):
        if hw % t == 0:
            best = t
        t += 128
    return best if best is not None else hw


def _stats_kernel(x_ref, w_ref, gamma_ref, beta_ref, scale_ref, shift_ref,
                  sum_sc, gram_sc, *, inv_m):
    """Pass 1: accumulate colsum(x) and X@X^T; finalize BN scale/shift.

    x_ref:               (1, Cin, tile_m)   current input tile
    w_ref:               (Cout, Cin)        1x1 conv weight
    gamma_ref/beta_ref:  (Cout, 1)
    scale_ref/shift_ref: (Cout, 1)          outputs (written at last grid step)
    sum_sc:              (Cin, 1)           f32 VMEM accumulator
    gram_sc:             (Cin, Cin)         f32 VMEM accumulator
    """
    first = (pl.program_id(0) == 0) & (pl.program_id(1) == 0)
    last = ((pl.program_id(0) == pl.num_programs(0) - 1)
            & (pl.program_id(1) == pl.num_programs(1) - 1))

    @pl.when(first)
    def _():
        sum_sc[...] = jnp.zeros_like(sum_sc)
        gram_sc[...] = jnp.zeros_like(gram_sc)

    x = x_ref[0]                                       # (Cin, tile_m)
    xf = x.astype(jnp.float32)
    sum_sc[...] += jnp.sum(xf, axis=1, keepdims=True)  # (Cin, 1)
    # Gram update: contract over the lane axis of both operands -> (Cin, Cin).
    gram_sc[...] += lax.dot_general(
        x, x, (((1,), (1,)), ((), ())), preferred_element_type=jnp.float32)

    @pl.when(last)
    def _():
        w = w_ref[...].astype(jnp.float32)                                 # (Cout, Cin)
        mean = jnp.dot(w, sum_sc[...],
                       preferred_element_type=jnp.float32) * inv_m         # (Cout, 1)
        wg = jnp.dot(w, gram_sc[...],
                     preferred_element_type=jnp.float32)                   # (Cout, Cin)
        ey2 = jnp.sum(wg * w, axis=1, keepdims=True) * inv_m               # (Cout, 1)
        var = jnp.maximum(ey2 - mean * mean, 0.0)
        scale = gamma_ref[...] * lax.rsqrt(var + BN_EPS)
        scale_ref[...] = scale
        shift_ref[...] = beta_ref[...] - mean * scale


def _norm_kernel(x_ref, w_ref, scale_ref, shift_ref, o_ref):
    """Pass 2: out = relu((W @ x) * scale + shift) with lane-dense stores."""
    x = x_ref[0]                                            # (Cin, tile_m)
    w = w_ref[...]                                          # (Cout, Cin)
    y = jnp.dot(w, x, preferred_element_type=jnp.float32)   # (Cout, tile_m)
    out = jnp.maximum(y * scale_ref[...] + shift_ref[...], 0.0)
    o_ref[0] = out.astype(o_ref.dtype)


def lin_forward(x_nchw, conv_w, conv_b, bn_gamma, bn_beta):
    """Forward of `lin`: ReLU(BatchNorm2d_train(Conv2d_1x1(x))).

    x_nchw: (N, Cin, H, W); conv_w: (Cout, Cin, 1, 1); conv_b/gamma/beta: (Cout,)
    conv_b is accepted for API parity but unused: training-mode BatchNorm
    subtracts the per-channel batch mean, which cancels a constant bias exactly
    (variance is also unaffected).
    """
    del conv_b  # mathematically cancelled by training-mode BN centering
    N, Cin, H, W = x_nchw.shape
    Cout = conv_w.shape[0]
    HW = H * W
    M = N * HW

    tile_m = _pick_tile_m(HW)
    num_m = HW // tile_m

    x3 = x_nchw.reshape(N, Cin, HW)                 # free view: no HBM transpose
    w = conv_w.reshape(Cout, Cin)
    g = bn_gamma.reshape(Cout, 1).astype(jnp.float32)
    b = bn_beta.reshape(Cout, 1).astype(jnp.float32)

    itemsize = jnp.dtype(x_nchw.dtype).itemsize
    x_bytes = N * Cin * HW * itemsize
    out_bytes = N * Cout * HW * itemsize
    small_bytes = (Cout * Cin + 4 * Cout) * 4

    # ---- Pass 1: global BN statistics -> per-channel (scale, shift) ----
    scale, shift = pl.pallas_call(
        functools.partial(_stats_kernel, inv_m=1.0 / M),
        out_shape=[jax.ShapeDtypeStruct((Cout, 1), jnp.float32),
                   jax.ShapeDtypeStruct((Cout, 1), jnp.float32)],
        grid=(N, num_m),
        in_specs=[
            pl.BlockSpec((1, Cin, tile_m), lambda n, m: (n, 0, m)),
            pl.BlockSpec((Cout, Cin), lambda n, m: (0, 0)),
            pl.BlockSpec((Cout, 1), lambda n, m: (0, 0)),
            pl.BlockSpec((Cout, 1), lambda n, m: (0, 0)),
        ],
        out_specs=[
            pl.BlockSpec((Cout, 1), lambda n, m: (0, 0)),
            pl.BlockSpec((Cout, 1), lambda n, m: (0, 0)),
        ],
        scratch_shapes=[
            pltpu.VMEM((Cin, 1), jnp.float32),
            pltpu.VMEM((Cin, Cin), jnp.float32),
        ],
        compiler_params=pltpu.CompilerParams(
            dimension_semantics=("arbitrary", "arbitrary")),
        cost_estimate=pl.CostEstimate(
            flops=2 * Cin * Cin * M + Cin * M,
            transcendentals=Cout,
            bytes_accessed=x_bytes + small_bytes),
    )(x3, w, g, b)

    # ---- Pass 2: y = W @ x ; out = relu(y*scale + shift) ----
    out3 = pl.pallas_call(
        _norm_kernel,
        out_shape=jax.ShapeDtypeStruct((N, Cout, HW), x_nchw.dtype),
        grid=(N, num_m),
        in_specs=[
            pl.BlockSpec((1, Cin, tile_m), lambda n, m: (n, 0, m)),
            pl.BlockSpec((Cout, Cin), lambda n, m: (0, 0)),
            pl.BlockSpec((Cout, 1), lambda n, m: (0, 0)),
            pl.BlockSpec((Cout, 1), lambda n, m: (0, 0)),
        ],
        out_specs=pl.BlockSpec((1, Cout, tile_m), lambda n, m: (n, 0, m)),
        compiler_params=pltpu.CompilerParams(
            dimension_semantics=("parallel", "parallel")),
        cost_estimate=pl.CostEstimate(
            flops=2 * Cout * Cin * M + 3 * Cout * M,
            transcendentals=0,
            bytes_accessed=x_bytes + out_bytes + small_bytes),
    )(x3, w, scale, shift)

    return out3.reshape(N, Cout, H, W)


if __name__ == "__main__":
    # small shapes consistent with the module: lin(numIn=4, numOut=8)
    N, Cin, H, W = 2, 4, 16, 16
    Cout = 8

    key = jax.random.PRNGKey(0)
    k_x, k_w, k_b = jax.random.split(key, 3)

    x = jax.random.normal(k_x, (N, Cin, H, W), dtype=jnp.float32)

    # PyTorch BN init: gamma=1, beta=0; conv bias present but cancelled by BN
    conv_w = 0.1 * jax.random.normal(k_w, (Cout, Cin, 1, 1), dtype=jnp.float32)
    conv_b = 0.1 * jax.random.normal(k_b, (Cout,), dtype=jnp.float32)
    bn_gamma = jnp.ones((Cout,), dtype=jnp.float32)
    bn_beta = jnp.zeros((Cout,), dtype=jnp.float32)

    out = lin_forward(x, conv_w, conv_b, bn_gamma, bn_beta)
    jax.block_until_ready(out)

    # reference in plain JAX (PyTorch training-mode BN: biased var, eps=1e-5)
    x2 = jnp.transpose(x, (0, 2, 3, 1)).reshape(-1, Cin)
    y = x2 @ conv_w.reshape(Cout, Cin).T + conv_b
    mean = y.mean(axis=0, keepdims=True)
    var = ((y - mean) ** 2).mean(axis=0, keepdims=True)
    ref = jnp.maximum((y - mean) / jnp.sqrt(var + BN_EPS) * bn_gamma + bn_beta, 0.0)
    ref = jnp.transpose(ref.reshape(N, H, W, Cout), (0, 3, 1, 2))
    assert jnp.allclose(out, ref, atol=1e-4, rtol=1e-4), "mismatch vs reference"

    print("KERNEL_OK")
</pallas_src>

<mosaic_0001>
module attributes {stable_mosaic.version = 11 : i64} {
  func.func @_stats_kernel(%arg0: i32, %arg1: i32, %arg2: memref<1x4x256xf32, #tpu.memory_space<vmem>>, %arg3: memref<8x4xf32, #tpu.memory_space<vmem>>, %arg4: memref<8x1xf32, #tpu.memory_space<vmem>>, %arg5: memref<8x1xf32, #tpu.memory_space<vmem>>, %arg6: memref<8x1xf32, #tpu.memory_space<vmem>>, %arg7: memref<8x1xf32, #tpu.memory_space<vmem>>, %arg8: memref<4x1xf32, #tpu.memory_space<vmem>>, %arg9: memref<4x4xf32, #tpu.memory_space<vmem>>) attributes {dimension_semantics = [#tpu.dimension_semantics<arbitrary>, #tpu.dimension_semantics<arbitrary>], iteration_bounds = array<i64: 2, 1>, scalar_prefetch = 0 : i64, scratch_operands = 2 : i64, tpu.core_type = #tpu.core_type<tc>, window_params = [{transform_indices = @transform_0, window_bounds = array<i64: 1, 4, 256>}, {pipeline_mode = #tpu.pipeline_mode<synchronous>, transform_indices = @transform_1, window_bounds = array<i64: 8, 4>}, {pipeline_mode = #tpu.pipeline_mode<synchronous>, transform_indices = @transform_2, window_bounds = array<i64: 8, 1>}, {pipeline_mode = #tpu.pipeline_mode<synchronous>, transform_indices = @transform_3, window_bounds = array<i64: 8, 1>}, {pipeline_mode = #tpu.pipeline_mode<synchronous>, transform_indices = @transform_4, window_bounds = array<i64: 8, 1>}, {pipeline_mode = #tpu.pipeline_mode<synchronous>, transform_indices = @transform_5, window_bounds = array<i64: 8, 1>}]} {
    %c0_i32 = arith.constant 0 : i32
    %0 = arith.cmpi eq, %arg0, %c0_i32 : i32
    %c0_i32_0 = arith.constant 0 : i32
    %1 = arith.cmpi eq, %arg1, %c0_i32_0 : i32
    %2 = arith.andi %0, %1 : i1
    %c1_i32 = arith.constant 1 : i32
    %3 = arith.cmpi eq, %arg0, %c1_i32 : i32
    %c0_i32_1 = arith.constant 0 : i32
    %4 = arith.cmpi eq, %arg1, %c0_i32_1 : i32
    %5 = arith.andi %3, %4 : i1
    %6 = arith.extui %2 : i1 to i32
    %c0_i32_2 = arith.constant 0 : i32
    %7 = arith.cmpi ne, %6, %c0_i32_2 : i32
    scf.if %7 {
      %cst_15 = arith.constant 0.000000e+00 : f32
      %21 = vector.broadcast %cst_15 : f32 to vector<4x1xf32>
      %c0_16 = arith.constant 0 : index
      %c0_17 = arith.constant 0 : index
      %22 = vector.load %arg8[%c0_16, %c0_17] : memref<4x1xf32, #tpu.memory_space<vmem>>, vector<4x1xf32>
      tpu.vector_store %arg8[%c0_16, %c0_17], %21 {strides = array<i32>} : memref<4x1xf32, #tpu.memory_space<vmem>>, vector<4x1xf32>,
      %cst_18 = arith.constant 0.000000e+00 : f32
      %23 = vector.broadcast %cst_18 : f32 to vector<4x4xf32>
      %c0_19 = arith.constant 0 : index
      %c0_20 = arith.constant 0 : index
      %24 = vector.load %arg9[%c0_19, %c0_20] : memref<4x4xf32, #tpu.memory_space<vmem>>, vector<4x4xf32>
      tpu.vector_store %arg9[%c0_19, %c0_20], %23 {strides = array<i32>} : memref<4x4xf32, #tpu.memory_space<vmem>>, vector<4x4xf32>,
    } else {
    }
    %c0 = arith.constant 0 : index
    %c0_3 = arith.constant 0 : index
    %c0_4 = arith.constant 0 : index
    %8 = vector.load %arg2[%c0, %c0_3, %c0_4] : memref<1x4x256xf32, #tpu.memory_space<vmem>>, vector<1x4x256xf32>
    %9 = vector.shape_cast %8 : vector<1x4x256xf32> to vector<4x256xf32>
    %c0_5 = arith.constant 0 : index
    %c0_6 = arith.constant 0 : index
    %10 = vector.load %arg8[%c0_5, %c0_6] : memref<4x1xf32, #tpu.memory_space<vmem>>, vector<4x1xf32>
    %cst = arith.constant dense<0.000000e+00> : vector<4xf32>
    %11 = vector.multi_reduction <add>, %9, %cst [1] : vector<4x256xf32> to vector<4xf32>
    %12 = vector.shape_cast %11 : vector<4xf32> to vector<4x1xf32>
    %13 = arith.addf %10, %12 : vector<4x1xf32>
    %c0_7 = arith.constant 0 : index
    %c0_8 = arith.constant 0 : index
    %14 = vector.load %arg8[%c0_7, %c0_8] : memref<4x1xf32, #tpu.memory_space<vmem>>, vector<4x1xf32>
    tpu.vector_store %arg8[%c0_7, %c0_8], %13 {strides = array<i32>} : memref<4x1xf32, #tpu.memory_space<vmem>>, vector<4x1xf32>,
    %c0_9 = arith.constant 0 : index
    %c0_10 = arith.constant 0 : index
    %15 = vector.load %arg9[%c0_9, %c0_10] : memref<4x4xf32, #tpu.memory_space<vmem>>, vector<4x4xf32>
    %cst_11 = arith.constant dense<0.000000e+00> : vector<4x4xf32>
    %16 = tpu.matmul %9, %9, %cst_11 {dimension_numbers = #tpu.dot_dimension_numbers<[1], [1], [0], [0], [0, 0, 1, 0], [], []>} : vector<4x256xf32>, vector<4x256xf32>, vector<4x4xf32> -> vector<4x4xf32>
    %17 = arith.addf %15, %16 : vector<4x4xf32>
    %c0_12 = arith.constant 0 : index
    %c0_13 = arith.constant 0 : index
    %18 = vector.load %arg9[%c0_12, %c0_13] : memref<4x4xf32, #tpu.memory_space<vmem>>, vector<4x4xf32>
    tpu.vector_store %arg9[%c0_12, %c0_13], %17 {strides = array<i32>} : memref<4x4xf32, #tpu.memory_space<vmem>>, vector<4x4xf32>,
    %19 = arith.extui %5 : i1 to i32
    %c0_i32_14 = arith.constant 0 : i32
    %20 = arith.cmpi ne, %19, %c0_i32_14 : i32
    scf.if %20 {
      %c0_15 = arith.constant 0 : index
      %c0_16 = arith.constant 0 : index
      %21 = vector.load %arg3[%c0_15, %c0_16] : memref<8x4xf32, #tpu.memory_space<vmem>>, vector<8x4xf32>
      %c0_17 = arith.constant 0 : index
      %c0_18 = arith.constant 0 : index
      %22 = vector.load %arg8[%c0_17, %c0_18] : memref<4x1xf32, #tpu.memory_space<vmem>>, vector<4x1xf32>
      %cst_19 = arith.constant dense<0.000000e+00> : vector<8x1xf32>
      %23 = tpu.matmul %21, %22, %cst_19 {dimension_numbers = #tpu.dot_dimension_numbers<[1], [0], [0], [1], [0, 0, 1, 1], [], []>} : vector<8x4xf32>, vector<4x1xf32>, vector<8x1xf32> -> vector<8x1xf32>
      %cst_20 = arith.constant 0.001953125 : f32
      %24 = vector.broadcast %cst_20 : f32 to vector<8x1xf32>
      %25 = arith.mulf %23, %24 : vector<8x1xf32>
      %c0_21 = arith.constant 0 : index
      %c0_22 = arith.constant 0 : index
      %26 = vector.load %arg9[%c0_21, %c0_22] : memref<4x4xf32, #tpu.memory_space<vmem>>, vector<4x4xf32>
      %cst_23 = arith.constant dense<0.000000e+00> : vector<8x4xf32>
      %27 = tpu.matmul %21, %26, %cst_23 {dimension_numbers = #tpu.dot_dimension_numbers<[1], [0], [0], [1], [0, 0, 1, 1], [], []>} : vector<8x4xf32>, vector<4x4xf32>, vector<8x4xf32> -> vector<8x4xf32>
      %28 = arith.mulf %27, %21 : vector<8x4xf32>
      %cst_24 = arith.constant dense<0.000000e+00> : vector<8xf32>
      %29 = vector.multi_reduction <add>, %28, %cst_24 [1] : vector<8x4xf32> to vector<8xf32>
      %30 = vector.shape_cast %29 : vector<8xf32> to vector<8x1xf32>
      %cst_25 = arith.constant 0.001953125 : f32
      %31 = vector.broadcast %cst_25 : f32 to vector<8x1xf32>
      %32 = arith.mulf %30, %31 : vector<8x1xf32>
      %33 = arith.mulf %25, %25 : vector<8x1xf32>
      %34 = arith.subf %32, %33 : vector<8x1xf32>
      %cst_26 = arith.constant 0.000000e+00 : f32
      %35 = vector.broadcast %cst_26 : f32 to vector<8x1xf32>
      %36 = arith.maximumf %34, %35 : vector<8x1xf32>
      %c0_27 = arith.constant 0 : index
      %c0_28 = arith.constant 0 : index
      %37 = vector.load %arg4[%c0_27, %c0_28] : memref<8x1xf32, #tpu.memory_space<vmem>>, vector<8x1xf32>
      %cst_29 = arith.constant 9.99999974E-6 : f32
      %38 = vector.broadcast %cst_29 : f32 to vector<8x1xf32>
      %39 = arith.addf %36, %38 : vector<8x1xf32>
      %40 = math.rsqrt %39 : vector<8x1xf32>
      %41 = arith.mulf %37, %40 : vector<8x1xf32>
      %c0_30 = arith.constant 0 : index
      %c0_31 = arith.constant 0 : index
      %42 = vector.load %arg6[%c0_30, %c0_31] : memref<8x1xf32, #tpu.memory_space<vmem>>, vector<8x1xf32>
      tpu.vector_store %arg6[%c0_30, %c0_31], %41 {strides = array<i32>} : memref<8x1xf32, #tpu.memory_space<vmem>>, vector<8x1xf32>,
      %c0_32 = arith.constant 0 : index
      %c0_33 = arith.constant 0 : index
      %43 = vector.load %arg5[%c0_32, %c0_33] : memref<8x1xf32, #tpu.memory_space<vmem>>, vector<8x1xf32>
      %44 = arith.mulf %25, %41 : vector<8x1xf32>
      %45 = arith.subf %43, %44 : vector<8x1xf32>
      %c0_34 = arith.constant 0 : index
      %c0_35 = arith.constant 0 : index
      %46 = vector.load %arg7[%c0_34, %c0_35] : memref<8x1xf32, #tpu.memory_space<vmem>>, vector<8x1xf32>
      tpu.vector_store %arg7[%c0_34, %c0_35], %45 {strides = array<i32>} : memref<8x1xf32, #tpu.memory_space<vmem>>, vector<8x1xf32>,
    } else {
    }
    return
  }
  func.func @transform_0(%arg0: i32, %arg1: i32) -> (i32, i32, i32) {
    %c0_i32 = arith.constant 0 : i32
    %c0_i32_0 = arith.constant 0 : i32
    return %arg0, %c0_i32, %arg1 : i32, i32, i32
  }
  func.func @transform_1(%arg0: i32, %arg1: i32) -> (i32, i32) {
    %c0_i32 = arith.constant 0 : i32
    %c0_i32_0 = arith.constant 0 : i32
    %c0_i32_1 = arith.constant 0 : i32
    return %c0_i32, %c0_i32_0 : i32, i32
  }
  func.func @transform_2(%arg0: i32, %arg1: i32) -> (i32, i32) {
    %c0_i32 = arith.constant 0 : i32
    %c0_i32_0 = arith.constant 0 : i32
    %c0_i32_1 = arith.constant 0 : i32
    return %c0_i32, %c0_i32_0 : i32, i32
  }
  func.func @transform_3(%arg0: i32, %arg1: i32) -> (i32, i32) {
    %c0_i32 = arith.constant 0 : i32
    %c0_i32_0 = arith.constant 0 : i32
    %c0_i32_1 = arith.constant 0 : i32
    return %c0_i32, %c0_i32_0 : i32, i32
  }
  func.func @transform_4(%arg0: i32, %arg1: i32) -> (i32, i32) {
    %c0_i32 = arith.constant 0 : i32
    %c0_i32_0 = arith.constant 0 : i32
    %c0_i32_1 = arith.constant 0 : i32
    return %c0_i32, %c0_i32_0 : i32, i32
  }
  func.func @transform_5(%arg0: i32, %arg1: i32) -> (i32, i32) {
    %c0_i32 = arith.constant 0 : i32
    %c0_i32_0 = arith.constant 0 : i32
    %c0_i32_1 = arith.constant 0 : i32
    return %c0_i32, %c0_i32_0 : i32, i32
  }
}

</mosaic_0001>

<bundles_post_ra>
// kernel: tpu_custom_call.1
= control target key start
LH: loop header
LB: loop body
LE: loop exit
PB: predicated region body
PF: predicated region fallthrough
CT: control target
= control target key end

     0   :  { %s550_s18 = smov 0   ;;  %s552_s19 = smov 0   ;;  %s607_s0 = inlined_call_operand.vmem [shape: f32[2,4,256], index: 0, kind: input, shape index: {}]   ;;  %s608_s1 = inlined_call_operand.vmem [shape: f32[8,4], index: 1, kind: input, shape index: {}]   ;;  %s609_s2 = inlined_call_operand.vmem [shape: f32[8,1], index: 2, kind: input, shape index: {}]   ;;  %s610_s3 = inlined_call_operand.vmem [shape: f32[8,1], index: 3, kind: input, shape index: {}]   ;;  %s611_s4 = inlined_call_operand.vmem [shape: f32[8,1], index: 4, kind: output, shape index: {0}]   ;;  %s612_s5 = inlined_call_operand.vmem [shape: f32[8,1], index: 5, kind: output, shape index: {1}]  }
   0x1   :  { %s554_s20 = smov 0  }
   0x2 LB: > { %s28_s21 = sadd.s32 1, %s513_s19  ;;  %p454_p0 = scmp.ge.s32.totalorder %s517_s20, 1  ;;  %s517_s20 = sphi %s554_s20, %s16_s20   ;;  %s513_s19 = sphi %s552_s19, %s614_s19   ;;  %s509_s18 = sphi %s550_s18, %s613_s18  }
   0x3   : > { %p30_p1 = scmp.ge.s32.totalorder %s28_s21, 2  ;;  %p199_p2 = scmp.lt.s32.totalorder %s517_s20, 3 }
   0x5   : > { %s616_s21 = smov (%p30_p1, %s28_s21), 0  ;;  %p200_p3 = pnand %p454_p0, %p199_p2 }
   0x6   : > { %p227_p4 = scmp.lt.s32.totalorder (!%p200_p3), %s509_s18, 1  ;;  %p236_p5 = scmp.eq.s32.totalorder (!%p200_p3), %s509_s18, 0 }
   0x7   : > { %203 = sbr.rel (%p200_p3) target bundleno = 463 (0x1cf), region = 36  ;;  %p240_p6 = scmp.eq.s32.totalorder (!%p200_p3), %s509_s18, 1 }
   0xc   : > { %s228_s22 = scalar_select %p227_p4, %s509_s18, 1  ;;  %vm245_vm0 = vcmask (%p236_p5), 3072   ;;  %vm247_vm1 = vcmask (%p236_p5), 27648   ;;  %v519_v0 = vmov (%p236_p5), 0.0  }
   0xd   : > { %244 = sbr.rel (!%p236_p5) target bundleno = 18 (0x12), region = 40  ;;  %246 = vst.msk [vmem:[#allocation2] sm:$0xf] (%p236_p5), %vm245_vm0, %v519_v0 }
   0xe   : > { %s465_s23 = sshll.u32 %s228_s22, 3  ;;  %248 = vst.msk [vmem:[#allocation3] sm:$0xf] (%p236_p5), %vm247_vm1, %v519_v0 }
   0xf   : > { %s234_s26 = scalar_lea.vmem %s607_s0, %s465_s23 }
  0x12 PF: > { %v249_v1 = vld [vmem:[%s234_s26] sm:$0xff]  ;;  %vm257_vm2 = vcmask 1043456   ;;  %vm264_vm3 = vcmask 3072   ;;  %vm318_vm4 = vcmask 27648   ;;  %vm324_vm5 = vcmask (%p240_p6), 31744  }
  0x13   : > { %252 = vst [vmem:[#allocation1] ss:$2 sm:$0xff] %v249_v1  ;;  %v322_v20 = vld [vmem:[%s608_s1] sm:$0xff] (%p240_p6)  ;;  %vm397_vm9 = vcmask (%p240_p6), 7168  }
  0x14   : > { %v250_v11 = vld [vmem:[#allocation2] sm:$0xf]  ;;  %v384_v38 = vld [vmem:[%s609_s2] sm:$0xff] (%p240_p6) }
  0x15   : > { %v266_v15 = vld [vmem:[#allocation3] sm:$0xf]  ;;  %v399_v42 = vld [vmem:[%s610_s3] sm:$0xff] (%p240_p6) }
  0x1a   : > { %v253_v2 = vld.sshfl [vmem:[#allocation1] sm:$0xff pattern:$0x75316420]  ;;  %v254_v3 = vld.sshfl [vmem:[#allocation1 + $0x8] sm:$0xff pattern:$0x75316420] }
  0x1b   : > { %267 = vst [vmem:[#allocation1] ss:$2 sm:$0xff] %v249_v1  ;;  %v258_v4 = vsel %vm257_vm2, %v253_v2, 0.0  ;;  %v259_v5 = vsel %vm257_vm2, %v254_v3, 0.0 }
  0x1c   : > { %v260_v6 = vadd.f32 %v259_v5, %v258_v4 }
  0x1e   : > { %261 = vadd.xlane.f32.xlu0 %v260_v6 }
  0x22   : > { %v268_v7 = vld.sshfl [vmem:[#allocation1] sm:$0xff pattern:$0x75316420]  ;;  %v269_v8 = vld.sshfl [vmem:[#allocation1 + $0x8] sm:$0xff pattern:$0x75316420] }
  0x23   : > { %272 = vst [vmem:[#allocation1] ss:$2 sm:$0xff] %v249_v1 }
  0x2a   : > { %v273_v9 = vld.sshfl [vmem:[#allocation1] sm:$0xff pattern:$0x75316420]  ;;  %v274_v10 = vld.sshfl [vmem:[#allocation1 + $0x8] sm:$0xff pattern:$0x75316420] }
  0x2b   : > { %292 = vmatpush.xpose.msra.mxu0 %v273_v9  ;;  %312 = vmatpush.xpose.msra.mxu1 %v274_v10 }
  0x2e   : > { %293 = vmatmul.f32.vlgmr.msra.gmra.mxu0 %v268_v7  ;;  %313 = vmatmul.f32.vlgmr.msra.gmra.mxu1 %v269_v8 }
  0x91   : > { %v262_v12 = vpop.xlane.xlu0 %261 }
  0x92   : > { %v263_v13 = vadd.f32 %v262_v12, %v250_v11 }
  0x94   : > { %265 = vst.msk [vmem:[#allocation2] sm:$0xf] %vm264_vm3, %v263_v13 }
  0x9b   : > { %v323_v21 = vld [vmem:[#allocation2] sm:$0xf] (%p240_p6) }
  0x9c   : > { %459 = vmatpush.msk.msra.mxu0 (%p240_p6), %vm257_vm2, %v323_v21 }
  0x9d   : > { %460 = vmatmul.msk.f32.vlgmr.msra.gmra.mxu0 (%p240_p6), %vm324_vm5, %v322_v20 }
  0xab   : > { %v294_v14 = vpop.f32.mrf.mxu0  ;;  %v314_v16 = vpop.f32.mrf.mxu1 }
  0xac   : > { %v315_v17 = vadd.f32 %v314_v16, %v294_v14  ;;  %321 = sbr.rel (!%p240_p6) target bundleno = 463 (0x1cf), region = 44 }
  0xae   : > { %v317_v18 = vadd.f32 %v315_v17, %v266_v15 }
  0xb0   : > { %319 = vst.msk [vmem:[#allocation3] sm:$0xf] %vm318_vm4, %v317_v18 }
  0xb7   : > { %v352_v19 = vld [vmem:[#allocation3] sm:$0xf] }
  0xb8   : > { %461 = vmatpush.msk.msra.mxu1 %vm257_vm2, %v352_v19 }
  0xb9   : > { %462 = vmatmul.msk.f32.vlgmr.msra.gmra.mxu1 %vm324_vm5, %v322_v20 }
 0x11a   : > { %v348_v25 = vpop.f32.mrf.mxu0 }
 0x11b   : > { %v351_v26 = vmul.f32 0.001953125, %v348_v25 }
 0x11d   : > { %v381_v27 = vmul.f32 %v351_v26, %v351_v26 }
 0x136   : > { %v373_v22 = vpop.f32.mrf.mxu1 }
 0x137   : > { %v376_v23 = vmul.f32 %v373_v22, %v322_v20 }
 0x139   : > { %v377_v24 = vsel %vm324_vm5, %v376_v23, 0.0 }
 0x13a   : > { %378 = vadd.xlane.f32.xlu0 %v377_v24 }
 0x1ad   : > { %v379_v28 = vpop.xlane.xlu0 %378 }
 0x1ae   : > { %v380_v29 = vmul.f32 0.001953125, %v379_v28 }
 0x1b0   : > { %v382_v30 = vsub.f32 %v380_v29, %v381_v27 }
 0x1b2   : > { %v383_v31 = vmax.f32 %v382_v30, 0.0 }
 0x1b4   : > { %v385_v32 = vadd.f32 1e-05, %v383_v31 }
 0x1b6   : > { %493 = vrsqrt.f32 %v385_v32  ;;  %vm392_vm7 = vweird.f32 %v385_v32 }
 0x1bc   : > { %v494_v33 = vpop.eup %493 }
 0x1bd   : > { %v387_v34 = vmul.f32 %v494_v33, %v385_v32  ;;  %vm393_vm6 = vweird.f32 %v494_v33 }
 0x1be   : > { %vm394_vm8 = vmor %vm392_vm7, %vm393_vm6 }
 0x1bf   : > { %v388_v35 = vmul.f32 %v494_v33, %v387_v34 }
 0x1c1   : > { %v389_v36 = vmul.f32 0.5, %v388_v35 }
 0x1c3   : > { %v390_v37 = vsub.f32 1.5, %v389_v36 }
 0x1c5   : > { %v391_v39 = vmul.f32 %v494_v33, %v390_v37 }
 0x1c7   : > { %v395_v40 = vsel %vm394_vm8, %v494_v33, %v391_v39 }
 0x1c8   : > { %v396_v41 = vmul.f32 %v395_v40, %v384_v38 }
 0x1ca   : > { %398 = vst.msk [vmem:[%s611_s4] sm:$0xff] %vm397_vm9, %v396_v41  ;;  %v400_v43 = vmul.f32 %v396_v41, %v351_v26 }
 0x1cc   : > { %v401_v44 = vsub.f32 %v399_v42, %v400_v43 }
 0x1ce   : > { %402 = vst.msk [vmem:[%s612_s5] sm:$0xff] %vm397_vm9, %v401_v44 }
 0x1cf PF: > { %s16_s20 = sadd.s32 1, %s517_s20   ;;  %s613_s18 = smov %s513_s19 }
 0x1d0   : > { %p13_p7 = scmp.ge.s32.totalorder %s16_s20, 4   ;;  %s614_s19 = smov %s616_s21 }
 0x1d2   :  { %15 = sbr.rel (!%p13_p7) target bundleno = 2 (0x2), region = 78 }

</bundles_post_ra>
